<compile_context>
chip_gen: v7x
topology: tpu7x:2x2x1
jax: 0.10.0
libtpu: 0.0.40
codegen_flags: <defaults>
</compile_context>

<pallas_src>
import jax
import jax.numpy as jnp
from jax import lax
from jax.experimental import pallas as pl
from jax.experimental.pallas import tpu as pltpu

NUM_CHANNEL = 4
BN_EPS = 1e-5

# Lane-axis tile: multiple of 128, sized so (2x bf16 patch buffers + 2x out
# buffers + scratch) stays a few MiB — comfortably inside the default scoped
# VMEM on v5e (16 MiB), v6e (32 MiB) and v7x (32 MiB scoped / 64 MiB physical).
# At K<=144, Cout<=32 and TILE_M=8192 the total is ~7 MiB.
DEFAULT_TILE_M = 8192
VMEM_LIMIT_BYTES = 32 * 1024 * 1024  # <= physical VMEM on every generation


def _cdiv(a, b):
    return (a + b - 1) // b


def _round_up(a, b):
    return _cdiv(a, b) * b


# ------------------------------ Pallas kernels ------------------------------
def _stats_kernel(p_ref, w_ref, s1_ref, s2_ref, a1_ref, a2_ref):
    """Phase 1: per-channel sum / sum-of-squares of y = W @ P over the M grid.

    p_ref  : (Kp, TILE_M) bf16   im2col patch tile (lane axis = B*Ho*Wo)
    w_ref  : (Cout, Kp)   bf16   reshaped, K-padded conv weight
    s1_ref : (Cout, 1)    f32    sum(y)      output
    s2_ref : (Cout, 1)    f32    sum(y*y)    output
    a1/a2  : (Cout, 1)    f32    VMEM scratch accumulators (resident over grid)
    """
    @pl.when(pl.program_id(0) == 0)
    def _():
        a1_ref[...] = jnp.zeros_like(a1_ref)
        a2_ref[...] = jnp.zeros_like(a2_ref)

    y = jnp.dot(w_ref[...], p_ref[...], preferred_element_type=jnp.float32)
    a1_ref[...] += jnp.sum(y, axis=1, keepdims=True)
    a2_ref[...] += jnp.sum(y * y, axis=1, keepdims=True)

    s1_ref[...] = a1_ref[...]
    s2_ref[...] = a2_ref[...]


def _norm_kernel(p_ref, w_ref, scale_ref, shift_ref, o_ref):
    """Phase 2: recompute y = W @ P for this M tile, folded BN FMA + ReLU.

    scale_ref/shift_ref : (Cout, 1) f32 precomputed gamma*rsqrt(var+eps) and
                          beta - mean*scale.
    o_ref               : (Cout, TILE_M) lane-dense output (unmasked stores).
    """
    y = jnp.dot(w_ref[...], p_ref[...], preferred_element_type=jnp.float32)
    o_ref[...] = jnp.maximum(y * scale_ref[...] + shift_ref[...], 0.0
                             ).astype(o_ref.dtype)


# ------------------------------ kernel wrapper ------------------------------
def conv_bn_relu(patches_km, w_ok, gamma, beta, out_dtype=jnp.float32):
    """One Conv2d(3,2,1)+BN(training)+ReLU layer on transposed im2col patches.

    patches_km : (K, M) bf16, K = Cin*9, M = B*Ho*Wo
    w_ok       : (Cout, K)
    returns    : (Cout, M) out_dtype
    """
    k_dim, m_dim = patches_km.shape
    c_out = w_ok.shape[0]

    # K padded for bf16 sublane packing so W and P agree (no in-kernel
    # relayout); M padded with zero columns so the lane axis tiles evenly.
    k_pad = _round_up(k_dim, 16)
    m128 = _round_up(m_dim, 128)
    n_tiles = _cdiv(m128, DEFAULT_TILE_M)
    tile_m = _round_up(_cdiv(m128, n_tiles), 128)
    m_pad = tile_m * n_tiles

    p = jnp.pad(patches_km.astype(jnp.bfloat16),
                ((0, k_pad - k_dim), (0, m_pad - m_dim)))
    w = jnp.pad(w_ok.astype(jnp.bfloat16), ((0, 0), (0, k_pad - k_dim)))

    flops = 2 * c_out * k_pad * m_pad
    stream_bytes = p.size * 2 + w.size * 2

    # ---- Phase 1: batch statistics (reduction over M -> "arbitrary"). ----
    s1, s2 = pl.pallas_call(
        _stats_kernel,
        out_shape=(jax.ShapeDtypeStruct((c_out, 1), jnp.float32),
                   jax.ShapeDtypeStruct((c_out, 1), jnp.float32)),
        grid_spec=pltpu.PrefetchScalarGridSpec(
            num_scalar_prefetch=0,
            grid=(n_tiles,),
            in_specs=[pl.BlockSpec((k_pad, tile_m), lambda i: (0, i)),
                      pl.BlockSpec((c_out, k_pad), lambda i: (0, 0))],
            out_specs=[pl.BlockSpec((c_out, 1), lambda i: (0, 0)),
                       pl.BlockSpec((c_out, 1), lambda i: (0, 0))],
            scratch_shapes=[pltpu.VMEM((c_out, 1), jnp.float32),
                            pltpu.VMEM((c_out, 1), jnp.float32)]),
        compiler_params=pltpu.CompilerParams(
            dimension_semantics=("arbitrary",),
            vmem_limit_bytes=VMEM_LIMIT_BYTES),
        cost_estimate=pl.CostEstimate(flops=flops, transcendentals=0,
                                      bytes_accessed=stream_bytes + 2 * c_out * 4),
    )(p, w)

    # Tiny per-channel BN fold (Cout <= 32 scalars) stays in XLA.  Padded M
    # columns are all-zero patches -> y == 0 -> contribute nothing to s1/s2;
    # divide by the TRUE element count m_dim (training-mode batch statistics).
    inv_m = 1.0 / m_dim
    mean = s1 * inv_m
    var = jnp.maximum(s2 * inv_m - mean * mean, 0.0)   # clamp: cancellation-safe
    inv_std = lax.rsqrt(var + BN_EPS)
    scale = gamma.reshape(c_out, 1).astype(jnp.float32) * inv_std
    shift = beta.reshape(c_out, 1).astype(jnp.float32) - mean * scale

    # ---- Phase 2: recompute matmul per tile, folded BN FMA + ReLU. ----
    out = pl.pallas_call(
        _norm_kernel,
        out_shape=jax.ShapeDtypeStruct((c_out, m_pad), out_dtype),
        grid_spec=pltpu.PrefetchScalarGridSpec(
            num_scalar_prefetch=0,
            grid=(n_tiles,),
            in_specs=[pl.BlockSpec((k_pad, tile_m), lambda i: (0, i)),
                      pl.BlockSpec((c_out, k_pad), lambda i: (0, 0)),
                      pl.BlockSpec((c_out, 1), lambda i: (0, 0)),
                      pl.BlockSpec((c_out, 1), lambda i: (0, 0))],
            out_specs=pl.BlockSpec((c_out, tile_m), lambda i: (0, i))),
        compiler_params=pltpu.CompilerParams(
            dimension_semantics=("parallel",),   # shards across v7x's 2 TCs
            vmem_limit_bytes=VMEM_LIMIT_BYTES),
        cost_estimate=pl.CostEstimate(
            flops=flops, transcendentals=0,
            bytes_accessed=stream_bytes
            + c_out * m_pad * jnp.dtype(out_dtype).itemsize),
    )(p, w, scale, shift)
    # TODO(synk): sweep pipeline_mode=pl.Buffered(2..3) on the patch BlockSpec
    # once on hardware; default double-buffering is used here.

    return out if m_pad == m_dim else out[:, :m_dim]


# ------------------------------- glue (JAX) ---------------------------------
def _im2col_t(x_cbhw, h_out, w_out):
    """3x3 / stride-2 / pad-1 im2col in transposed (Cin*9, B*Ho*Wo) layout.

    x_cbhw is channel-major (C, B, H, W) (bf16 in the kernel path).  Row order
    is c*9 + (kh*3 + kw), matching w.reshape(Cout, Cin*9) of an OIHW weight.
    """
    c, b, _, _ = x_cbhw.shape
    xp = jnp.pad(x_cbhw, ((0, 0), (0, 0), (1, 1), (1, 1)))
    taps = [xp[:, :, kh:kh + 2 * h_out:2, kw:kw + 2 * w_out:2]
            for kh in range(3) for kw in range(3)]
    p = jnp.stack(taps, axis=1)                     # (C, 9, B, Ho, Wo)
    return p.reshape(c * 9, b * h_out * w_out)
    # TODO(synk): tap extraction stays host-side XLA (2.25x expansion for
    # k=3/s=2); in-kernel gathering would need a strided lane relayout of the
    # (C, B*H*W) slab that Mosaic does not lower cleanly.


def image_pre_processor(x, params):
    """Full ImagePreProcessor forward.  x: (B, NUM_CHANNEL, H, W) NCHW f32."""
    b, c_in, h, w = x.shape
    h1, w1 = (h + 1) // 2, (w + 1) // 2
    h2, w2 = (h1 + 1) // 2, (w1 + 1) // 2
    c1, c2 = params["w1"].shape[0], params["w2"].shape[0]

    # The conv biases b1/b2 are intentionally NOT used: under training-mode
    # BatchNorm they cancel exactly in (y - mean).  Verified vs the
    # bias-using reference in __main__.
    # Patches are produced directly in bf16: cast before im2col, so only one
    # bf16 patch slab ever exists in HBM.
    x_cm = jnp.transpose(x, (1, 0, 2, 3)).astype(jnp.bfloat16)    # (C, B, H, W)
    p1 = _im2col_t(x_cm, h1, w1)                                  # (Cin*9, B*H1*W1)
    a1 = conv_bn_relu(p1, params["w1"].reshape(c1, c_in * 9),
                      params["g1"], params["be1"],
                      out_dtype=jnp.bfloat16)                     # (C1, M1) bf16

    # Layer 2 — intermediate stays channel-major bf16 (no NCHW round trip,
    # half the writeback / im2col-read traffic); final output in f32.
    p2 = _im2col_t(a1.reshape(c1, b, h1, w1), h2, w2)             # (C1*9, B*H2*W2)
    a2 = conv_bn_relu(p2, params["w2"].reshape(c2, c1 * 9),
                      params["g2"], params["be2"],
                      out_dtype=jnp.float32)                      # (C2, M2) f32

    return jnp.transpose(a2.reshape(c2, b, h2, w2), (1, 0, 2, 3))  # NCHW


# --------------------------- pure-JAX reference -----------------------------
def _ref_layer(x, w, bias, gamma, beta):
    # Same math as the PyTorch layer (training-mode BN).  Conv operands are
    # cast to bf16 to mirror the kernel's MXU operand precision; accumulation
    # and all BN math stay f32.
    y = lax.conv_general_dilated(
        x.astype(jnp.bfloat16), w.astype(jnp.bfloat16),
        window_strides=(2, 2), padding=((1, 1), (1, 1)),
        dimension_numbers=("NCHW", "OIHW", "NCHW"),
        preferred_element_type=jnp.float32)
    y = y + bias[None, :, None, None]      # kept here: cancels in BN below
    mean = jnp.mean(y, axis=(0, 2, 3), keepdims=True)
    var = jnp.mean((y - mean) ** 2, axis=(0, 2, 3), keepdims=True)
    y_hat = (y - mean) * lax.rsqrt(var + BN_EPS)
    return jnp.maximum(gamma[None, :, None, None] * y_hat
                       + beta[None, :, None, None], 0.0)


def _ref_forward(x, p):
    y = _ref_layer(x, p["w1"], p["b1"], p["g1"], p["be1"])
    return _ref_layer(y, p["w2"], p["b2"], p["g2"], p["be2"])


# ----------------------------------- main ------------------------------------
if __name__ == "__main__":
    key = jax.random.PRNGKey(0)
    kx, kw1, kb1, kg1, ke1, kw2, kb2, kg2, ke2 = jax.random.split(key, 9)

    params = {
        "w1": jax.random.normal(kw1, (16, NUM_CHANNEL, 3, 3), jnp.float32) * 0.1,
        "b1": jax.random.normal(kb1, (16,), jnp.float32) * 0.1,
        "g1": 1.0 + 0.1 * jax.random.normal(kg1, (16,), jnp.float32),
        "be1": 0.1 * jax.random.normal(ke1, (16,), jnp.float32),
        "w2": jax.random.normal(kw2, (32, 16, 3, 3), jnp.float32) * 0.1,
        "b2": jax.random.normal(kb2, (32,), jnp.float32) * 0.1,
        "g2": 1.0 + 0.1 * jax.random.normal(kg2, (32,), jnp.float32),
        "be2": 0.1 * jax.random.normal(ke2, (32,), jnp.float32),
    }

    # Small NCHW input: batch=2, channels=NUM_CHANNEL, spatial=16.
    x = jax.random.normal(kx, (2, NUM_CHANNEL, 16, 16), jnp.float32)

    out = jax.block_until_ready(jax.jit(image_pre_processor)(x, params))
    assert out.shape == (2, 32, 4, 4), out.shape

    ref = jax.block_until_ready(_ref_forward(x, params))
    # Tolerance accounts for bf16 MXU operands, the bf16 intermediate, and
    # differing f32 reduction orders between im2col-matmul and lax.conv.
    assert jnp.allclose(out, ref, rtol=1e-2, atol=1e-2), \
        f"mismatch vs reference, max abs err {float(jnp.max(jnp.abs(out - ref)))}"

    print("KERNEL_OK")
</pallas_src>

<mosaic_0001>
module attributes {stable_mosaic.version = 11 : i64} {
  func.func @_stats_kernel(%arg0: i32, %arg1: memref<48x128xbf16, #tpu.memory_space<vmem>>, %arg2: memref<16x48xbf16, #tpu.memory_space<vmem>>, %arg3: memref<16x1xf32, #tpu.memory_space<vmem>>, %arg4: memref<16x1xf32, #tpu.memory_space<vmem>>, %arg5: memref<16x1xf32, #tpu.memory_space<vmem>>, %arg6: memref<16x1xf32, #tpu.memory_space<vmem>>) attributes {dimension_semantics = [#tpu.dimension_semantics<arbitrary>], iteration_bounds = array<i64: 1>, scalar_prefetch = 0 : i64, scratch_operands = 2 : i64, tpu.core_type = #tpu.core_type<tc>, window_params = [{transform_indices = @transform_0, window_bounds = array<i64: 48, 128>}, {pipeline_mode = #tpu.pipeline_mode<synchronous>, transform_indices = @transform_1, window_bounds = array<i64: 16, 48>}, {pipeline_mode = #tpu.pipeline_mode<synchronous>, transform_indices = @transform_2, window_bounds = array<i64: 16, 1>}, {pipeline_mode = #tpu.pipeline_mode<synchronous>, transform_indices = @transform_3, window_bounds = array<i64: 16, 1>}]} {
    %c0_i32 = arith.constant 0 : i32
    %0 = arith.cmpi eq, %arg0, %c0_i32 : i32
    %1 = arith.extui %0 : i1 to i32
    %c0_i32_0 = arith.constant 0 : i32
    %2 = arith.cmpi ne, %1, %c0_i32_0 : i32
    scf.if %2 {
      %cst_22 = arith.constant 0.000000e+00 : f32
      %21 = vector.broadcast %cst_22 : f32 to vector<16x1xf32>
      %c0_23 = arith.constant 0 : index
      %c0_24 = arith.constant 0 : index
      %22 = vector.load %arg5[%c0_23, %c0_24] : memref<16x1xf32, #tpu.memory_space<vmem>>, vector<16x1xf32>
      tpu.vector_store %arg5[%c0_23, %c0_24], %21 {strides = array<i32>} : memref<16x1xf32, #tpu.memory_space<vmem>>, vector<16x1xf32>,
      %cst_25 = arith.constant 0.000000e+00 : f32
      %23 = vector.broadcast %cst_25 : f32 to vector<16x1xf32>
      %c0_26 = arith.constant 0 : index
      %c0_27 = arith.constant 0 : index
      %24 = vector.load %arg6[%c0_26, %c0_27] : memref<16x1xf32, #tpu.memory_space<vmem>>, vector<16x1xf32>
      tpu.vector_store %arg6[%c0_26, %c0_27], %23 {strides = array<i32>} : memref<16x1xf32, #tpu.memory_space<vmem>>, vector<16x1xf32>,
    } else {
    }
    %c0 = arith.constant 0 : index
    %c0_1 = arith.constant 0 : index
    %3 = vector.load %arg2[%c0, %c0_1] : memref<16x48xbf16, #tpu.memory_space<vmem>>, vector<16x48xbf16>
    %c0_2 = arith.constant 0 : index
    %c0_3 = arith.constant 0 : index
    %4 = vector.load %arg1[%c0_2, %c0_3] : memref<48x128xbf16, #tpu.memory_space<vmem>>, vector<48x128xbf16>
    %cst = arith.constant dense<0.000000e+00> : vector<16x128xf32>
    %5 = tpu.matmul %3, %4, %cst {dimension_numbers = #tpu.dot_dimension_numbers<[1], [0], [0], [1], [0, 0, 1, 1], [], []>} : vector<16x48xbf16>, vector<48x128xbf16>, vector<16x128xf32> -> vector<16x128xf32>
    %c0_4 = arith.constant 0 : index
    %c0_5 = arith.constant 0 : index
    %6 = vector.load %arg5[%c0_4, %c0_5] : memref<16x1xf32, #tpu.memory_space<vmem>>, vector<16x1xf32>
    %cst_6 = arith.constant dense<0.000000e+00> : vector<16xf32>
    %7 = vector.multi_reduction <add>, %5, %cst_6 [1] : vector<16x128xf32> to vector<16xf32>
    %8 = vector.shape_cast %7 : vector<16xf32> to vector<16x1xf32>
    %9 = arith.addf %6, %8 : vector<16x1xf32>
    %c0_7 = arith.constant 0 : index
    %c0_8 = arith.constant 0 : index
    %10 = vector.load %arg5[%c0_7, %c0_8] : memref<16x1xf32, #tpu.memory_space<vmem>>, vector<16x1xf32>
    tpu.vector_store %arg5[%c0_7, %c0_8], %9 {strides = array<i32>} : memref<16x1xf32, #tpu.memory_space<vmem>>, vector<16x1xf32>,
    %c0_9 = arith.constant 0 : index
    %c0_10 = arith.constant 0 : index
    %11 = vector.load %arg6[%c0_9, %c0_10] : memref<16x1xf32, #tpu.memory_space<vmem>>, vector<16x1xf32>
    %12 = arith.mulf %5, %5 : vector<16x128xf32>
    %cst_11 = arith.constant dense<0.000000e+00> : vector<16xf32>
    %13 = vector.multi_reduction <add>, %12, %cst_11 [1] : vector<16x128xf32> to vector<16xf32>
    %14 = vector.shape_cast %13 : vector<16xf32> to vector<16x1xf32>
    %15 = arith.addf %11, %14 : vector<16x1xf32>
    %c0_12 = arith.constant 0 : index
    %c0_13 = arith.constant 0 : index
    %16 = vector.load %arg6[%c0_12, %c0_13] : memref<16x1xf32, #tpu.memory_space<vmem>>, vector<16x1xf32>
    tpu.vector_store %arg6[%c0_12, %c0_13], %15 {strides = array<i32>} : memref<16x1xf32, #tpu.memory_space<vmem>>, vector<16x1xf32>,
    %c0_14 = arith.constant 0 : index
    %c0_15 = arith.constant 0 : index
    %17 = vector.load %arg5[%c0_14, %c0_15] : memref<16x1xf32, #tpu.memory_space<vmem>>, vector<16x1xf32>
    %c0_16 = arith.constant 0 : index
    %c0_17 = arith.constant 0 : index
    %18 = vector.load %arg3[%c0_16, %c0_17] : memref<16x1xf32, #tpu.memory_space<vmem>>, vector<16x1xf32>
    tpu.vector_store %arg3[%c0_16, %c0_17], %17 {strides = array<i32>} : memref<16x1xf32, #tpu.memory_space<vmem>>, vector<16x1xf32>,
    %c0_18 = arith.constant 0 : index
    %c0_19 = arith.constant 0 : index
    %19 = vector.load %arg6[%c0_18, %c0_19] : memref<16x1xf32, #tpu.memory_space<vmem>>, vector<16x1xf32>
    %c0_20 = arith.constant 0 : index
    %c0_21 = arith.constant 0 : index
    %20 = vector.load %arg4[%c0_20, %c0_21] : memref<16x1xf32, #tpu.memory_space<vmem>>, vector<16x1xf32>
    tpu.vector_store %arg4[%c0_20, %c0_21], %19 {strides = array<i32>} : memref<16x1xf32, #tpu.memory_space<vmem>>, vector<16x1xf32>,
    return
  }
  func.func @transform_0(%arg0: i32) -> (i32, i32) {
    %c0_i32 = arith.constant 0 : i32
    %c0_i32_0 = arith.constant 0 : i32
    return %c0_i32, %arg0 : i32, i32
  }
  func.func @transform_1(%arg0: i32) -> (i32, i32) {
    %c0_i32 = arith.constant 0 : i32
    %c0_i32_0 = arith.constant 0 : i32
    %c0_i32_1 = arith.constant 0 : i32
    return %c0_i32, %c0_i32_0 : i32, i32
  }
  func.func @transform_2(%arg0: i32) -> (i32, i32) {
    %c0_i32 = arith.constant 0 : i32
    %c0_i32_0 = arith.constant 0 : i32
    %c0_i32_1 = arith.constant 0 : i32
    return %c0_i32, %c0_i32_0 : i32, i32
  }
  func.func @transform_3(%arg0: i32) -> (i32, i32) {
    %c0_i32 = arith.constant 0 : i32
    %c0_i32_0 = arith.constant 0 : i32
    %c0_i32_1 = arith.constant 0 : i32
    return %c0_i32, %c0_i32_0 : i32, i32
  }
}

module attributes {stable_mosaic.version = 11 : i64} {
  func.func @_norm_kernel(%arg0: i32, %arg1: memref<48x128xbf16, #tpu.memory_space<vmem>>, %arg2: memref<16x48xbf16, #tpu.memory_space<vmem>>, %arg3: memref<16x1xf32, #tpu.memory_space<vmem>>, %arg4: memref<16x1xf32, #tpu.memory_space<vmem>>, %arg5: memref<16x128xbf16, #tpu.memory_space<vmem>>) attributes {dimension_semantics = [#tpu.dimension_semantics<parallel>], iteration_bounds = array<i64: 1>, scalar_prefetch = 0 : i64, scratch_operands = 0 : i64, tpu.core_type = #tpu.core_type<tc>, window_params = [{transform_indices = @transform_0, window_bounds = array<i64: 48, 128>}, {pipeline_mode = #tpu.pipeline_mode<synchronous>, transform_indices = @transform_1, window_bounds = array<i64: 16, 48>}, {pipeline_mode = #tpu.pipeline_mode<synchronous>, transform_indices = @transform_2, window_bounds = array<i64: 16, 1>}, {pipeline_mode = #tpu.pipeline_mode<synchronous>, transform_indices = @transform_3, window_bounds = array<i64: 16, 1>}, {transform_indices = @transform_4, window_bounds = array<i64: 16, 128>}]} {
    %c0 = arith.constant 0 : index
    %c0_0 = arith.constant 0 : index
    %0 = vector.load %arg2[%c0, %c0_0] : memref<16x48xbf16, #tpu.memory_space<vmem>>, vector<16x48xbf16>
    %c0_1 = arith.constant 0 : index
    %c0_2 = arith.constant 0 : index
    %1 = vector.load %arg1[%c0_1, %c0_2] : memref<48x128xbf16, #tpu.memory_space<vmem>>, vector<48x128xbf16>
    %cst = arith.constant dense<0.000000e+00> : vector<16x128xf32>
    %2 = tpu.matmul %0, %1, %cst {dimension_numbers = #tpu.dot_dimension_numbers<[1], [0], [0], [1], [0, 0, 1, 1], [], []>} : vector<16x48xbf16>, vector<48x128xbf16>, vector<16x128xf32> -> vector<16x128xf32>
    %c0_3 = arith.constant 0 : index
    %c0_4 = arith.constant 0 : index
    %3 = vector.load %arg3[%c0_3, %c0_4] : memref<16x1xf32, #tpu.memory_space<vmem>>, vector<16x1xf32>
    %4 = vector.broadcast %3 : vector<16x1xf32> to vector<16x128xf32>
    %5 = arith.mulf %2, %4 : vector<16x128xf32>
    %c0_5 = arith.constant 0 : index
    %c0_6 = arith.constant 0 : index
    %6 = vector.load %arg4[%c0_5, %c0_6] : memref<16x1xf32, #tpu.memory_space<vmem>>, vector<16x1xf32>
    %7 = vector.broadcast %6 : vector<16x1xf32> to vector<16x128xf32>
    %8 = arith.addf %5, %7 : vector<16x128xf32>
    %cst_7 = arith.constant 0.000000e+00 : f32
    %9 = vector.broadcast %cst_7 : f32 to vector<16x128xf32>
    %10 = arith.maximumf %8, %9 : vector<16x128xf32>
    %11 = arith.truncf %10 : vector<16x128xf32> to vector<16x128xbf16>
    %c0_8 = arith.constant 0 : index
    %c0_9 = arith.constant 0 : index
    %12 = vector.load %arg5[%c0_8, %c0_9] : memref<16x128xbf16, #tpu.memory_space<vmem>>, vector<16x128xbf16>
    tpu.vector_store %arg5[%c0_8, %c0_9], %11 {strides = array<i32>} : memref<16x128xbf16, #tpu.memory_space<vmem>>, vector<16x128xbf16>,
    return
  }
  func.func @transform_0(%arg0: i32) -> (i32, i32) {
    %c0_i32 = arith.constant 0 : i32
    %c0_i32_0 = arith.constant 0 : i32
    return %c0_i32, %arg0 : i32, i32
  }
  func.func @transform_1(%arg0: i32) -> (i32, i32) {
    %c0_i32 = arith.constant 0 : i32
    %c0_i32_0 = arith.constant 0 : i32
    %c0_i32_1 = arith.constant 0 : i32
    return %c0_i32, %c0_i32_0 : i32, i32
  }
  func.func @transform_2(%arg0: i32) -> (i32, i32) {
    %c0_i32 = arith.constant 0 : i32
    %c0_i32_0 = arith.constant 0 : i32
    %c0_i32_1 = arith.constant 0 : i32
    return %c0_i32, %c0_i32_0 : i32, i32
  }
  func.func @transform_3(%arg0: i32) -> (i32, i32) {
    %c0_i32 = arith.constant 0 : i32
    %c0_i32_0 = arith.constant 0 : i32
    %c0_i32_1 = arith.constant 0 : i32
    return %c0_i32, %c0_i32_0 : i32, i32
  }
  func.func @transform_4(%arg0: i32) -> (i32, i32) {
    %c0_i32 = arith.constant 0 : i32
    %c0_i32_0 = arith.constant 0 : i32
    return %c0_i32, %arg0 : i32, i32
  }
}

module attributes {stable_mosaic.version = 11 : i64} {
  func.func @_stats_kernel(%arg0: i32, %arg1: memref<144x128xbf16, #tpu.memory_space<vmem>>, %arg2: memref<32x144xbf16, #tpu.memory_space<vmem>>, %arg3: memref<32x1xf32, #tpu.memory_space<vmem>>, %arg4: memref<32x1xf32, #tpu.memory_space<vmem>>, %arg5: memref<32x1xf32, #tpu.memory_space<vmem>>, %arg6: memref<32x1xf32, #tpu.memory_space<vmem>>) attributes {dimension_semantics = [#tpu.dimension_semantics<arbitrary>], iteration_bounds = array<i64: 1>, scalar_prefetch = 0 : i64, scratch_operands = 2 : i64, tpu.core_type = #tpu.core_type<tc>, window_params = [{transform_indices = @transform_0, window_bounds = array<i64: 144, 128>}, {pipeline_mode = #tpu.pipeline_mode<synchronous>, transform_indices = @transform_1, window_bounds = array<i64: 32, 144>}, {pipeline_mode = #tpu.pipeline_mode<synchronous>, transform_indices = @transform_2, window_bounds = array<i64: 32, 1>}, {pipeline_mode = #tpu.pipeline_mode<synchronous>, transform_indices = @transform_3, window_bounds = array<i64: 32, 1>}]} {
    %c0_i32 = arith.constant 0 : i32
    %0 = arith.cmpi eq, %arg0, %c0_i32 : i32
    %1 = arith.extui %0 : i1 to i32
    %c0_i32_0 = arith.constant 0 : i32
    %2 = arith.cmpi ne, %1, %c0_i32_0 : i32
    scf.if %2 {
      %cst_22 = arith.constant 0.000000e+00 : f32
      %21 = vector.broadcast %cst_22 : f32 to vector<32x1xf32>
      %c0_23 = arith.constant 0 : index
      %c0_24 = arith.constant 0 : index
      %22 = vector.load %arg5[%c0_23, %c0_24] : memref<32x1xf32, #tpu.memory_space<vmem>>, vector<32x1xf32>
      tpu.vector_store %arg5[%c0_23, %c0_24], %21 {strides = array<i32>} : memref<32x1xf32, #tpu.memory_space<vmem>>, vector<32x1xf32>,
      %cst_25 = arith.constant 0.000000e+00 : f32
      %23 = vector.broadcast %cst_25 : f32 to vector<32x1xf32>
      %c0_26 = arith.constant 0 : index
      %c0_27 = arith.constant 0 : index
      %24 = vector.load %arg6[%c0_26, %c0_27] : memref<32x1xf32, #tpu.memory_space<vmem>>, vector<32x1xf32>
      tpu.vector_store %arg6[%c0_26, %c0_27], %23 {strides = array<i32>} : memref<32x1xf32, #tpu.memory_space<vmem>>, vector<32x1xf32>,
    } else {
    }
    %c0 = arith.constant 0 : index
    %c0_1 = arith.constant 0 : index
    %3 = vector.load %arg2[%c0, %c0_1] : memref<32x144xbf16, #tpu.memory_space<vmem>>, vector<32x144xbf16>
    %c0_2 = arith.constant 0 : index
    %c0_3 = arith.constant 0 : index
    %4 = vector.load %arg1[%c0_2, %c0_3] : memref<144x128xbf16, #tpu.memory_space<vmem>>, vector<144x128xbf16>
    %cst = arith.constant dense<0.000000e+00> : vector<32x128xf32>
    %5 = tpu.matmul %3, %4, %cst {dimension_numbers = #tpu.dot_dimension_numbers<[1], [0], [0], [1], [0, 0, 1, 1], [], []>} : vector<32x144xbf16>, vector<144x128xbf16>, vector<32x128xf32> -> vector<32x128xf32>
    %c0_4 = arith.constant 0 : index
    %c0_5 = arith.constant 0 : index
    %6 = vector.load %arg5[%c0_4, %c0_5] : memref<32x1xf32, #tpu.memory_space<vmem>>, vector<32x1xf32>
    %cst_6 = arith.constant dense<0.000000e+00> : vector<32xf32>
    %7 = vector.multi_reduction <add>, %5, %cst_6 [1] : vector<32x128xf32> to vector<32xf32>
    %8 = vector.shape_cast %7 : vector<32xf32> to vector<32x1xf32>
    %9 = arith.addf %6, %8 : vector<32x1xf32>
    %c0_7 = arith.constant 0 : index
    %c0_8 = arith.constant 0 : index
    %10 = vector.load %arg5[%c0_7, %c0_8] : memref<32x1xf32, #tpu.memory_space<vmem>>, vector<32x1xf32>
    tpu.vector_store %arg5[%c0_7, %c0_8], %9 {strides = array<i32>} : memref<32x1xf32, #tpu.memory_space<vmem>>, vector<32x1xf32>,
    %c0_9 = arith.constant 0 : index
    %c0_10 = arith.constant 0 : index
    %11 = vector.load %arg6[%c0_9, %c0_10] : memref<32x1xf32, #tpu.memory_space<vmem>>, vector<32x1xf32>
    %12 = arith.mulf %5, %5 : vector<32x128xf32>
    %cst_11 = arith.constant dense<0.000000e+00> : vector<32xf32>
    %13 = vector.multi_reduction <add>, %12, %cst_11 [1] : vector<32x128xf32> to vector<32xf32>
    %14 = vector.shape_cast %13 : vector<32xf32> to vector<32x1xf32>
    %15 = arith.addf %11, %14 : vector<32x1xf32>
    %c0_12 = arith.constant 0 : index
    %c0_13 = arith.constant 0 : index
    %16 = vector.load %arg6[%c0_12, %c0_13] : memref<32x1xf32, #tpu.memory_space<vmem>>, vector<32x1xf32>
    tpu.vector_store %arg6[%c0_12, %c0_13], %15 {strides = array<i32>} : memref<32x1xf32, #tpu.memory_space<vmem>>, vector<32x1xf32>,
    %c0_14 = arith.constant 0 : index
    %c0_15 = arith.constant 0 : index
    %17 = vector.load %arg5[%c0_14, %c0_15] : memref<32x1xf32, #tpu.memory_space<vmem>>, vector<32x1xf32>
    %c0_16 = arith.constant 0 : index
    %c0_17 = arith.constant 0 : index
    %18 = vector.load %arg3[%c0_16, %c0_17] : memref<32x1xf32, #tpu.memory_space<vmem>>, vector<32x1xf32>
    tpu.vector_store %arg3[%c0_16, %c0_17], %17 {strides = array<i32>} : memref<32x1xf32, #tpu.memory_space<vmem>>, vector<32x1xf32>,
    %c0_18 = arith.constant 0 : index
    %c0_19 = arith.constant 0 : index
    %19 = vector.load %arg6[%c0_18, %c0_19] : memref<32x1xf32, #tpu.memory_space<vmem>>, vector<32x1xf32>
    %c0_20 = arith.constant 0 : index
    %c0_21 = arith.constant 0 : index
    %20 = vector.load %arg4[%c0_20, %c0_21] : memref<32x1xf32, #tpu.memory_space<vmem>>, vector<32x1xf32>
    tpu.vector_store %arg4[%c0_20, %c0_21], %19 {strides = array<i32>} : memref<32x1xf32, #tpu.memory_space<vmem>>, vector<32x1xf32>,
    return
  }
  func.func @transform_0(%arg0: i32) -> (i32, i32) {
    %c0_i32 = arith.constant 0 : i32
    %c0_i32_0 = arith.constant 0 : i32
    return %c0_i32, %arg0 : i32, i32
  }
  func.func @transform_1(%arg0: i32) -> (i32, i32) {
    %c0_i32 = arith.constant 0 : i32
    %c0_i32_0 = arith.constant 0 : i32
    %c0_i32_1 = arith.constant 0 : i32
    return %c0_i32, %c0_i32_0 : i32, i32
  }
  func.func @transform_2(%arg0: i32) -> (i32, i32) {
    %c0_i32 = arith.constant 0 : i32
    %c0_i32_0 = arith.constant 0 : i32
    %c0_i32_1 = arith.constant 0 : i32
    return %c0_i32, %c0_i32_0 : i32, i32
  }
  func.func @transform_3(%arg0: i32) -> (i32, i32) {
    %c0_i32 = arith.constant 0 : i32
    %c0_i32_0 = arith.constant 0 : i32
    %c0_i32_1 = arith.constant 0 : i32
    return %c0_i32, %c0_i32_0 : i32, i32
  }
}

module attributes {stable_mosaic.version = 11 : i64} {
  func.func @_norm_kernel(%arg0: i32, %arg1: memref<144x128xbf16, #tpu.memory_space<vmem>>, %arg2: memref<32x144xbf16, #tpu.memory_space<vmem>>, %arg3: memref<32x1xf32, #tpu.memory_space<vmem>>, %arg4: memref<32x1xf32, #tpu.memory_space<vmem>>, %arg5: memref<32x128xf32, #tpu.memory_space<vmem>>) attributes {dimension_semantics = [#tpu.dimension_semantics<parallel>], iteration_bounds = array<i64: 1>, scalar_prefetch = 0 : i64, scratch_operands = 0 : i64, tpu.core_type = #tpu.core_type<tc>, window_params = [{transform_indices = @transform_0, window_bounds = array<i64: 144, 128>}, {pipeline_mode = #tpu.pipeline_mode<synchronous>, transform_indices = @transform_1, window_bounds = array<i64: 32, 144>}, {pipeline_mode = #tpu.pipeline_mode<synchronous>, transform_indices = @transform_2, window_bounds = array<i64: 32, 1>}, {pipeline_mode = #tpu.pipeline_mode<synchronous>, transform_indices = @transform_3, window_bounds = array<i64: 32, 1>}, {transform_indices = @transform_4, window_bounds = array<i64: 32, 128>}]} {
    %c0 = arith.constant 0 : index
    %c0_0 = arith.constant 0 : index
    %0 = vector.load %arg2[%c0, %c0_0] : memref<32x144xbf16, #tpu.memory_space<vmem>>, vector<32x144xbf16>
    %c0_1 = arith.constant 0 : index
    %c0_2 = arith.constant 0 : index
    %1 = vector.load %arg1[%c0_1, %c0_2] : memref<144x128xbf16, #tpu.memory_space<vmem>>, vector<144x128xbf16>
    %cst = arith.constant dense<0.000000e+00> : vector<32x128xf32>
    %2 = tpu.matmul %0, %1, %cst {dimension_numbers = #tpu.dot_dimension_numbers<[1], [0], [0], [1], [0, 0, 1, 1], [], []>} : vector<32x144xbf16>, vector<144x128xbf16>, vector<32x128xf32> -> vector<32x128xf32>
    %c0_3 = arith.constant 0 : index
    %c0_4 = arith.constant 0 : index
    %3 = vector.load %arg3[%c0_3, %c0_4] : memref<32x1xf32, #tpu.memory_space<vmem>>, vector<32x1xf32>
    %4 = vector.broadcast %3 : vector<32x1xf32> to vector<32x128xf32>
    %5 = arith.mulf %2, %4 : vector<32x128xf32>
    %c0_5 = arith.constant 0 : index
    %c0_6 = arith.constant 0 : index
    %6 = vector.load %arg4[%c0_5, %c0_6] : memref<32x1xf32, #tpu.memory_space<vmem>>, vector<32x1xf32>
    %7 = vector.broadcast %6 : vector<32x1xf32> to vector<32x128xf32>
    %8 = arith.addf %5, %7 : vector<32x128xf32>
    %cst_7 = arith.constant 0.000000e+00 : f32
    %9 = vector.broadcast %cst_7 : f32 to vector<32x128xf32>
    %10 = arith.maximumf %8, %9 : vector<32x128xf32>
    %c0_8 = arith.constant 0 : index
    %c0_9 = arith.constant 0 : index
    %11 = vector.load %arg5[%c0_8, %c0_9] : memref<32x128xf32, #tpu.memory_space<vmem>>, vector<32x128xf32>
    tpu.vector_store %arg5[%c0_8, %c0_9], %10 {strides = array<i32>} : memref<32x128xf32, #tpu.memory_space<vmem>>, vector<32x128xf32>,
    return
  }
  func.func @transform_0(%arg0: i32) -> (i32, i32) {
    %c0_i32 = arith.constant 0 : i32
    %c0_i32_0 = arith.constant 0 : i32
    return %c0_i32, %arg0 : i32, i32
  }
  func.func @transform_1(%arg0: i32) -> (i32, i32) {
    %c0_i32 = arith.constant 0 : i32
    %c0_i32_0 = arith.constant 0 : i32
    %c0_i32_1 = arith.constant 0 : i32
    return %c0_i32, %c0_i32_0 : i32, i32
  }
  func.func @transform_2(%arg0: i32) -> (i32, i32) {
    %c0_i32 = arith.constant 0 : i32
    %c0_i32_0 = arith.constant 0 : i32
    %c0_i32_1 = arith.constant 0 : i32
    return %c0_i32, %c0_i32_0 : i32, i32
  }
  func.func @transform_3(%arg0: i32) -> (i32, i32) {
    %c0_i32 = arith.constant 0 : i32
    %c0_i32_0 = arith.constant 0 : i32
    %c0_i32_1 = arith.constant 0 : i32
    return %c0_i32, %c0_i32_0 : i32, i32
  }
  func.func @transform_4(%arg0: i32) -> (i32, i32) {
    %c0_i32 = arith.constant 0 : i32
    %c0_i32_0 = arith.constant 0 : i32
    return %c0_i32, %arg0 : i32, i32
  }
}

</mosaic_0001>

<bundles_post_ra>
// kernel: image_pre_processor.4
= control target key start
LH: loop header
LB: loop body
LE: loop exit
PB: predicated region body
PF: predicated region fallthrough
CT: control target
= control target key end

     0   :  { %v163_v0 = vmov 0.0   ;;  %vm164_vm0 = vmmov 0   ;;  %vm54_vm1 = vcmask 392192   ;;  %vm18_vm2 = vcmask 7168   ;;  %s221_s0 = inlined_call_operand.vmem [shape: bf16[48,128], index: 0, kind: input, shape index: {}]   ;;  %s222_s1 = inlined_call_operand.vmem [shape: bf16[16,48], index: 1, kind: input, shape index: {}]   ;;  %s223_s2 = inlined_call_operand.vmem [shape: f32[16,1], index: 2, kind: output, shape index: {0}]   ;;  %s224_s3 = inlined_call_operand.vmem [shape: f32[16,1], index: 3, kind: output, shape index: {1}]  }
   0x1   :  { %147 = vmatprep.subr.bf16.mxu0 %v163_v0  ;;  %v159_v1 = vld [vmem:[%s221_s0] sm:$0xff]   ;;  %153 = vmatprep.mubr.msk.bf16.mxu0 %vm164_vm0, %v163_v0  ;;  %v160_v2 = vld [vmem:[%s221_s0 + $0x8] sm:$0xff]   ;;  %v161_v3 = vld [vmem:[%s221_s0 + $0x10] sm:$0xff]   ;;  %19 = vst.msk [vmem:[#allocation2] sm:$0xff] %vm18_vm2, %v163_v0 }
   0x2   :  { %148 = vmatpush3.bf16.msra.mxu0 %v159_v1  ;;  %v162_v4 = vld [vmem:[%s222_s1] sm:$0xff]   ;;  %20 = vst.msk [vmem:[#allocation2 + $0x8] sm:$0xff] %vm18_vm2, %v163_v0  ;;  %21 = vst.msk [vmem:[#allocation3] sm:$0xff] %vm18_vm2, %v163_v0 }
   0x3   :  { %149 = vmatprep.subr.bf16.mxu0 %v163_v0  ;;  %22 = vst.msk [vmem:[#allocation3 + $0x8] sm:$0xff] %vm18_vm2, %v163_v0 }
   0x6   :  { %150 = vmatpush3.bf16.msra.mxu0 %v160_v2 }
   0x7   :  { %151 = vmatprep.subr.bf16.mxu0 %v163_v0 }
   0x8   :  { %v99_v11 = vld [vmem:[#allocation2] sm:$0xff] }
   0x9   :  { %v110_v13 = vld [vmem:[#allocation3] sm:$0xff]  ;;  %v100_v16 = vld [vmem:[#allocation2 + $0x8] sm:$0xff] }
   0xa   :  { %152 = vmatpush3.bf16.msra.mxu0 %v161_v3  ;;  %v111_v19 = vld [vmem:[#allocation3 + $0x8] sm:$0xff] }
   0xd   :  { %154 = vmatmul.mubr.msk.bf16.vlgmr.msra.gmra.mrb[0].mxu0 %vm54_vm1, %v162_v4 }
  0xe0   :  { %v92_v5 = vpop.f32.mrb[0].mxu0 }
  0xe1   :  { %101 = vadd.xlane.f32.xlu0 %v92_v5  ;;  %v155_v6 = vpop.f32.mrb[1].mxu0  ;;  %v112_v7 = vmul.f32 %v92_v5, %v92_v5 }
  0xe2   :  { %v95_v8 = vpop.f32.mrb[2].mxu0 }
  0xe3   :  { %114 = vadd.xlane.f32.xlu1 %v112_v7  ;;  %v156_v9 = vpop.f32.mrb[3].mxu0  ;;  %v113_v10 = vmul.f32 %v95_v8, %v95_v8 }
  0xe5   :  { %103 = vadd.xlane.f32.xlu0 %v95_v8 }
  0xe7   :  { %116 = vadd.xlane.f32.xlu1 %v113_v10 }
 0x16e   :  { %v102_v12 = vpop.xlane.xlu0 %101 }
 0x16f   :  { %v105_v14 = vadd.f32 %v102_v12, %v99_v11 }
 0x170   :  { %v115_v15 = vpop.xlane.xlu1 %114 }
 0x171   :  { %108 = vst.msk [vmem:[#allocation2] sm:$0xff] %vm18_vm2, %v105_v14  ;;  %v118_v17 = vadd.f32 %v115_v15, %v110_v13 }
 0x172   :  { %v104_v18 = vpop.xlane.xlu0 %103 }
 0x173   :  { %120 = vst.msk [vmem:[#allocation3] sm:$0xff] %vm18_vm2, %v118_v17  ;;  %v106_v20 = vadd.f32 %v104_v18, %v100_v16 }
 0x174   :  { %v117_v21 = vpop.xlane.xlu1 %116 }
 0x175   :  { %109 = vst.msk [vmem:[#allocation2 + $0x8] sm:$0xff] %vm18_vm2, %v106_v20  ;;  %v119_v22 = vadd.f32 %v117_v21, %v111_v19 }
 0x177   :  { %121 = vst.msk [vmem:[#allocation3 + $0x8] sm:$0xff] %vm18_vm2, %v119_v22 }
 0x178   :  { %v122_v23 = vld [vmem:[#allocation2] sm:$0xff] }
 0x179   :  { %124 = vst.msk [vmem:[%s223_s2] sm:$0xff] %vm18_vm2, %v122_v23 }
 0x17a   :  { %v126_v24 = vld [vmem:[#allocation3] sm:$0xff] }
 0x17b   :  { %128 = vst.msk [vmem:[%s224_s3] sm:$0xff] %vm18_vm2, %v126_v24 }
 0x17c   :  { %v123_v25 = vld [vmem:[#allocation2 + $0x8] sm:$0xff] }
 0x17d   :  { %125 = vst.msk [vmem:[%s223_s2 + $0x8] sm:$0xff] %vm18_vm2, %v123_v25 }
 0x17e   :  { %v127_v26 = vld [vmem:[#allocation3 + $0x8] sm:$0xff] }
 0x17f   :  { %129 = vst.msk [vmem:[%s224_s3 + $0x8] sm:$0xff] %vm18_vm2, %v127_v26 }

// kernel: image_pre_processor.5
= control target key start
LH: loop header
LB: loop body
LE: loop exit
PB: predicated region body
PF: predicated region fallthrough
CT: control target
= control target key end

     0   :  { %v175_v0 = vmov 0.0   ;;  %vm176_vm0 = vmmov 0   ;;  %v177_v2 = vmov 0   ;;  %vm49_vm1 = vcmask 392192   ;;  %s230_s0 = inlined_call_operand.vmem [shape: bf16[48,128], index: 0, kind: input, shape index: {}]   ;;  %s231_s2 = inlined_call_operand.vmem [shape: f32[16,1], index: 2, kind: input, shape index: {}]   ;;  %s232_s3 = inlined_call_operand.vmem [shape: f32[16,1], index: 3, kind: input, shape index: {}]   ;;  %s233_s1 = inlined_call_operand.vmem [shape: bf16[16,48], index: 1, kind: input, shape index: {}]   ;;  %s234_s4 = inlined_call_operand.vmem [shape: bf16[16,128], index: 4, kind: output, shape index: {}]  }
   0x1   :  { %156 = vmatprep.subr.bf16.mxu0 %v175_v0  ;;  %v171_v1 = vld [vmem:[%s230_s0] sm:$0xff]   ;;  %162 = vmatprep.mubr.msk.bf16.mxu0 %vm176_vm0, %v175_v0  ;;  %v172_v3 = vld [vmem:[%s230_s0 + $0x8] sm:$0xff]   ;;  %v173_v6 = vld [vmem:[%s230_s0 + $0x10] sm:$0xff]  }
   0x2   :  { %169 = vset.pattern.permute.xlu0 %v177_v2  ;;  %170 = vset.pattern.permute.xlu1 %v177_v2  ;;  %v94_v4 = vld [vmem:[%s231_s2] sm:$0xff]  ;;  %v95_v7 = vld [vmem:[%s231_s2 + $0x8] sm:$0xff] }
   0x3   :  { %157 = vmatpush3.bf16.msra.mxu0 %v171_v1  ;;  %v108_v5 = vld [vmem:[%s232_s3] sm:$0xff]  ;;  %98 = vperm.xlu0 %169, %v94_v4   ;;  %v109_v8 = vld [vmem:[%s232_s3 + $0x8] sm:$0xff] }
   0x4   :  { %158 = vmatprep.subr.bf16.mxu0 %v175_v0  ;;  %112 = vperm.xlu1 %170, %v108_v5   ;;  %v174_v9 = vld [vmem:[%s233_s1] sm:$0xff]  }
   0x7   :  { %159 = vmatpush3.bf16.msra.mxu0 %v172_v3  ;;  %103 = vperm.xlu0 %169, %v95_v7  }
   0x8   :  { %160 = vmatprep.subr.bf16.mxu0 %v175_v0  ;;  %117 = vperm.xlu1 %170, %v109_v8  }
   0xb   :  { %161 = vmatpush3.bf16.msra.mxu0 %v173_v6 }
   0xe   :  { %163 = vmatmul.mubr.msk.bf16.vlgmr.msra.gmra.mrb[0].mxu0 %vm49_vm1, %v174_v9 }
  0x82   :  { %v99_v10 = vpop.permute.xlu0 %98 }
  0x83   :  { %v113_v11 = vpop.permute.xlu1 %112 }
  0x86   :  { %v104_v15 = vpop.permute.xlu0 %103 }
  0x87   :  { %v118_v20 = vpop.permute.xlu1 %117 }
  0xe1   :  { %v87_v12 = vpop.f32.mrb[0].mxu0 }
  0xe2   :  { %v106_v13 = vmul.f32 %v99_v10, %v87_v12  ;;  %v164_v14 = vpop.f32.mrb[1].mxu0 }
  0xe3   :  { %v90_v16 = vpop.f32.mrb[2].mxu0 }
  0xe4   :  { %v120_v17 = vadd.f32 %v113_v11, %v106_v13  ;;  %v107_v18 = vmul.f32 %v104_v15, %v90_v16  ;;  %v165_v19 = vpop.f32.mrb[3].mxu0 }
  0xe6   :  { %v121_v21 = vadd.f32 %v118_v20, %v107_v18  ;;  %v122_v22 = vmax.f32 %v120_v17, 0.0 }
  0xe8   :  { %v123_v23 = vmax.f32 %v121_v21, 0.0 }
  0xea   :  { %v150_v24 = vpack.c.bf16 %v123_v23, %v122_v22 }
  0xec   :  { %151 = vst [vmem:[%s234_s4] sm:$0xff] %v150_v24  }

// kernel: image_pre_processor.6
= control target key start
LH: loop header
LB: loop body
LE: loop exit
PB: predicated region body
PF: predicated region fallthrough
CT: control target
= control target key end

     0   :  { %v296_v0 = vmov 0   ;;  %vm121_vm0 = vcmask 130048   ;;  %vm18_vm1 = vcmask 7168   ;;  %v297_v14 = vmov 0.0   ;;  %s405_s0 = inlined_call_operand.vmem [shape: bf16[144,128], index: 0, kind: input, shape index: {}]   ;;  %s406_s1 = inlined_call_operand.vmem [shape: bf16[32,144], index: 1, kind: input, shape index: {}]   ;;  %s407_s2 = inlined_call_operand.vmem [shape: f32[32,1], index: 2, kind: output, shape index: {0}]   ;;  %s408_s3 = inlined_call_operand.vmem [shape: f32[32,1], index: 3, kind: output, shape index: {1}]  }
   0x1   :  { %128 = vmatprep.subr.bf16.mxu0 %v296_v0  ;;  %261 = vmatprep.subr.bf16.mxu1 %v296_v0  ;;  %v281_v1 = vld [vmem:[%s405_s0] sm:$0xff]   ;;  %v282_v2 = vld [vmem:[%s405_s0 + $0x8] sm:$0xff]   ;;  %v283_v3 = vld [vmem:[%s405_s0 + $0x10] sm:$0xff]   ;;  %21 = vst.msk [vmem:[#allocation2 + $0x10] sm:$0xff] %vm18_vm1, %v297_v14 }
   0x2   :  { %129 = vmatpush1.bf16.msra.mxu0 %v281_v1  ;;  %270 = vmatpush1.bf16.msra.mxu1 %v281_v1  ;;  %v284_v4 = vld [vmem:[%s405_s0 + $0x18] sm:$0xff]   ;;  %v292_v5 = vld [vmem:[%s406_s1 + $0x4] ss:$8 sps:$4 sm:$0xff]   ;;  %v287_v9 = vld [vmem:[%s405_s0 + $0x30] sm:$0xff]   ;;  %19 = vst.msk [vmem:[#allocation2] sm:$0xff] %vm18_vm1, %v297_v14 }
   0x3   :  { %130 = vmatprep.subr.bf16.mxu0 %v296_v0  ;;  %262 = vmatprep.subr.bf16.mxu1 %v296_v0  ;;  %v295_v6 = vld [vmem:[%s406_s1 + $0x14] ss:$8 sps:$4 sm:$0xff]   ;;  %v285_v7 = vld [vmem:[%s405_s0 + $0x20] sm:$0xff]   ;;  %v286_v8 = vld [vmem:[%s405_s0 + $0x28] sm:$0xff]   ;;  %20 = vst.msk [vmem:[#allocation2 + $0x8] sm:$0xff] %vm18_vm1, %v297_v14 }
   0x4   :  { %259 = vmatprep.mubr.msk.bf16.mxu0 %vm121_vm0, %v292_v5  ;;  %260 = vmatprep.mubr.msk.bf16.mxu1 %vm121_vm0, %v295_v6  ;;  %v288_v10 = vld [vmem:[%s405_s0 + $0x38] sm:$0xff]   ;;  %v289_v11 = vld [vmem:[%s405_s0 + $0x40] sm:$0xff]   ;;  %22 = vst.msk [vmem:[#allocation2 + $0x18] sm:$0xff] %vm18_vm1, %v297_v14  ;;  %23 = vst.msk [vmem:[#allocation3] sm:$0xff] %vm18_vm1, %v297_v14 }
   0x5   :  { %v290_v12 = vld [vmem:[%s406_s1] ss:$8 sps:$4 sm:$0xff]   ;;  %v293_v13 = vld [vmem:[%s406_s1 + $0x10] ss:$8 sps:$4 sm:$0xff]   ;;  %24 = vst.msk [vmem:[#allocation3 + $0x8] sm:$0xff] %vm18_vm1, %v297_v14  ;;  %25 = vst.msk [vmem:[#allocation3 + $0x10] sm:$0xff] %vm18_vm1, %v297_v14 }
   0x6   :  { %131 = vmatpush1.bf16.msra.mxu0 %v282_v2  ;;  %271 = vmatpush1.bf16.msra.mxu1 %v282_v2  ;;  %26 = vst.msk [vmem:[#allocation3 + $0x18] sm:$0xff] %vm18_vm1, %v297_v14 }
   0x7   :  { %132 = vmatprep.subr.bf16.mxu0 %v296_v0  ;;  %263 = vmatprep.subr.bf16.mxu1 %v296_v0 }
   0x8   :  { %v179_v27 = vld [vmem:[#allocation2 + $0x10] sm:$0xff] }
   0x9   :  { %v177_v28 = vld [vmem:[#allocation2] sm:$0xff] }
   0xa   :  { %133 = vmatpush1.bf16.msra.mxu0 %v283_v3  ;;  %272 = vmatpush1.bf16.msra.mxu1 %v283_v3  ;;  %v178_v34 = vld [vmem:[#allocation2 + $0x8] sm:$0xff] }
   0xb   :  { %134 = vmatprep.subr.bf16.mxu0 %v296_v0  ;;  %264 = vmatprep.subr.bf16.mxu1 %v296_v0  ;;  %v180_v33 = vld [vmem:[#allocation2 + $0x18] sm:$0xff]  ;;  %v198_v39 = vld [vmem:[#allocation3] sm:$0xff] }
   0xc   :  { %v199_v40 = vld [vmem:[#allocation3 + $0x8] sm:$0xff]  ;;  %v200_v45 = vld [vmem:[#allocation3 + $0x10] sm:$0xff] }
   0xd   :  { %v201_v48 = vld [vmem:[#allocation3 + $0x18] sm:$0xff] }
   0xe   :  { %135 = vmatpush1.bf16.msra.mxu0 %v284_v4  ;;  %273 = vmatpush1.bf16.msra.mxu1 %v284_v4 }
   0xf   :  { %136 = vmatprep.subr.bf16.mxu0 %v296_v0  ;;  %265 = vmatprep.subr.bf16.mxu1 %v296_v0 }
  0x12   :  { %137 = vmatpush1.bf16.msra.mxu0 %v285_v7  ;;  %274 = vmatpush1.bf16.msra.mxu1 %v285_v7 }
  0x13   :  { %138 = vmatprep.subr.bf16.mxu0 %v296_v0  ;;  %266 = vmatprep.subr.bf16.mxu1 %v296_v0 }
  0x16   :  { %139 = vmatpush1.bf16.msra.mxu0 %v286_v8  ;;  %275 = vmatpush1.bf16.msra.mxu1 %v286_v8 }
  0x17   :  { %140 = vmatprep.subr.bf16.mxu0 %v296_v0  ;;  %267 = vmatprep.subr.bf16.mxu1 %v296_v0 }
  0x1a   :  { %141 = vmatpush1.bf16.msra.mxu0 %v287_v9  ;;  %276 = vmatpush1.bf16.msra.mxu1 %v287_v9 }
  0x1b   :  { %142 = vmatprep.subr.bf16.mxu0 %v296_v0  ;;  %268 = vmatprep.subr.bf16.mxu1 %v296_v0 }
  0x1e   :  { %143 = vmatpush1.bf16.msra.mxu0 %v288_v10  ;;  %277 = vmatpush1.bf16.msra.mxu1 %v288_v10 }
  0x1f   :  { %144 = vmatprep.subr.bf16.mxu0 %v296_v0  ;;  %269 = vmatprep.subr.bf16.mxu1 %v296_v0 }
  0x22   :  { %145 = vmatpush1.bf16.msra.mxu0 %v289_v11  ;;  %278 = vmatpush1.bf16.msra.mxu1 %v289_v11 }
  0x25   :  { %161 = vmatmul.mubr.bf16.vlgmr.msra.gmra.mrb[0].mxu0 %v290_v12  ;;  %169 = vmatmul.mubr.bf16.vlgmr.msra.gmra.mrb[0].mxu1 %v293_v13 }
  0xf8   :  { %v162_v15 = vpop.f32.mrb[0].mxu0  ;;  %v170_v16 = vpop.f32.mrb[0].mxu1 }
  0xf9   :  { %185 = vadd.xlane.f32.xlu1 %v170_v16  ;;  %v172_v17 = vpop.f32.mrb[1].mxu1  ;;  %181 = vadd.xlane.f32.xlu0 %v162_v15  ;;  %v164_v18 = vpop.f32.mrb[1].mxu0  ;;  %v202_v23 = vmul.f32 %v162_v15, %v162_v15  ;;  %v204_v25 = vmul.f32 %v170_v16, %v170_v16 }
  0xfa   :  { %v165_v19 = vpop.f32.mrb[2].mxu0  ;;  %v173_v20 = vpop.f32.mrb[2].mxu1 }
  0xfb   :  { %v167_v21 = vpop.f32.mrb[3].mxu0  ;;  %v175_v22 = vpop.f32.mrb[3].mxu1  ;;  %v203_v24 = vmul.f32 %v165_v19, %v165_v19  ;;  %v205_v26 = vmul.f32 %v173_v20, %v173_v20 }
  0xfd   :  { %187 = vadd.xlane.f32.xlu1 %v173_v20  ;;  %183 = vadd.xlane.f32.xlu0 %v165_v19 }
 0x101   :  { %206 = vadd.xlane.f32.xlu0 %v202_v23  ;;  %208 = vadd.xlane.f32.xlu1 %v203_v24 }
 0x105   :  { %210 = vadd.xlane.f32.xlu0 %v204_v25  ;;  %212 = vadd.xlane.f32.xlu1 %v205_v26 }
 0x186   :  { %v186_v29 = vpop.xlane.xlu1 %185  ;;  %v182_v30 = vpop.xlane.xlu0 %181 }
 0x187   :  { %v191_v31 = vadd.f32 %v186_v29, %v179_v27  ;;  %v189_v32 = vadd.f32 %v182_v30, %v177_v28 }
 0x189   :  { %196 = vst.msk [vmem:[#allocation2 + $0x10] sm:$0xff] %vm18_vm1, %v191_v31  ;;  %194 = vst.msk [vmem:[#allocation2] sm:$0xff] %vm18_vm1, %v189_v32 }
 0x18a   :  { %v188_v35 = vpop.xlane.xlu1 %187  ;;  %v184_v36 = vpop.xlane.xlu0 %183 }
 0x18b   :  { %v192_v37 = vadd.f32 %v188_v35, %v180_v33  ;;  %v190_v38 = vadd.f32 %v184_v36, %v178_v34 }
 0x18d   :  { %197 = vst.msk [vmem:[#allocation2 + $0x18] sm:$0xff] %vm18_vm1, %v192_v37  ;;  %195 = vst.msk [vmem:[#allocation2 + $0x8] sm:$0xff] %vm18_vm1, %v190_v38 }
 0x18e   :  { %v207_v41 = vpop.xlane.xlu0 %206  ;;  %v209_v42 = vpop.xlane.xlu1 %208 }
 0x18f   :  { %v214_v43 = vadd.f32 %v207_v41, %v198_v39  ;;  %v215_v44 = vadd.f32 %v209_v42, %v199_v40 }
 0x190   :  { %v224_v46 = vld [vmem:[#allocation2 + $0x10] sm:$0xff]  ;;  %v222_v47 = vld [vmem:[#allocation2] sm:$0xff] }
 0x191   :  { %228 = vst.msk [vmem:[%s407_s2 + $0x10] sm:$0xff] %vm18_vm1, %v224_v46  ;;  %226 = vst.msk [vmem:[%s407_s2] sm:$0xff] %vm18_vm1, %v222_v47 }
 0x192   :  { %218 = vst.msk [vmem:[#allocation3] sm:$0xff] %vm18_vm1, %v214_v43  ;;  %219 = vst.msk [vmem:[#allocation3 + $0x8] sm:$0xff] %vm18_vm1, %v215_v44  ;;  %v211_v49 = vpop.xlane.xlu0 %210  ;;  %v213_v50 = vpop.xlane.xlu1 %212 }
 0x193   :  { %v216_v51 = vadd.f32 %v211_v49, %v200_v45  ;;  %v217_v52 = vadd.f32 %v213_v50, %v201_v48 }
 0x194   :  { %v225_v53 = vld [vmem:[#allocation2 + $0x18] sm:$0xff]  ;;  %v223_v54 = vld [vmem:[#allocation2 + $0x8] sm:$0xff] }
 0x195   :  { %229 = vst.msk [vmem:[%s407_s2 + $0x18] sm:$0xff] %vm18_vm1, %v225_v53  ;;  %227 = vst.msk [vmem:[%s407_s2 + $0x8] sm:$0xff] %vm18_vm1, %v223_v54 }
 0x196   :  { %220 = vst.msk [vmem:[#allocation3 + $0x10] sm:$0xff] %vm18_vm1, %v216_v51  ;;  %221 = vst.msk [vmem:[#allocation3 + $0x18] sm:$0xff] %vm18_vm1, %v217_v52 }
 0x199   :  { %v230_v55 = vld [vmem:[#allocation3] sm:$0xff]  ;;  %v231_v56 = vld [vmem:[#allocation3 + $0x8] sm:$0xff] }
 0x19a   :  { %234 = vst.msk [vmem:[%s408_s3] sm:$0xff] %vm18_vm1, %v230_v55  ;;  %235 = vst.msk [vmem:[%s408_s3 + $0x8] sm:$0xff] %vm18_vm1, %v231_v56 }
 0x19d   :  { %v232_v57 = vld [vmem:[#allocation3 + $0x10] sm:$0xff]  ;;  %v233_v58 = vld [vmem:[#allocation3 + $0x18] sm:$0xff] }
 0x19e   :  { %236 = vst.msk [vmem:[%s408_s3 + $0x10] sm:$0xff] %vm18_vm1, %v232_v57  ;;  %237 = vst.msk [vmem:[%s408_s3 + $0x18] sm:$0xff] %vm18_vm1, %v233_v58 }

// kernel: image_pre_processor.7
= control target key start
LH: loop header
LB: loop body
LE: loop exit
PB: predicated region body
PF: predicated region fallthrough
CT: control target
= control target key end

     0   :  { %v287_v0 = vmov 0   ;;  %vm112_vm0 = vcmask 130048   ;;  %s408_s0 = inlined_call_operand.vmem [shape: bf16[144,128], index: 0, kind: input, shape index: {}]   ;;  %s409_s1 = inlined_call_operand.vmem [shape: bf16[32,144], index: 1, kind: input, shape index: {}]   ;;  %s410_s2 = inlined_call_operand.vmem [shape: f32[32,1], index: 2, kind: input, shape index: {}]   ;;  %s411_s3 = inlined_call_operand.vmem [shape: f32[32,1], index: 3, kind: input, shape index: {}]   ;;  %s412_s4 = inlined_call_operand.vmem [shape: f32[32,128], index: 4, kind: output, shape index: {}]  }
   0x1   :  { %119 = vmatprep.subr.bf16.mxu0 %v287_v0  ;;  %251 = vmatprep.subr.bf16.mxu1 %v287_v0  ;;  %v272_v1 = vld [vmem:[%s408_s0] sm:$0xff]   ;;  %v273_v2 = vld [vmem:[%s408_s0 + $0x8] sm:$0xff]   ;;  %v274_v3 = vld [vmem:[%s408_s0 + $0x10] sm:$0xff]  }
   0x2   :  { %271 = vset.pattern.permute.xlu1 %v287_v0  ;;  %270 = vset.pattern.permute.xlu0 %v287_v0  ;;  %v275_v4 = vld [vmem:[%s408_s0 + $0x18] sm:$0xff]   ;;  %v283_v5 = vld [vmem:[%s409_s1 + $0x4] ss:$8 sps:$4 sm:$0xff]   ;;  %v170_v7 = vld [vmem:[%s410_s2 + $0x10] sm:$0xff] }
   0x3   :  { %120 = vmatpush1.bf16.msra.mxu0 %v272_v1  ;;  %260 = vmatpush1.bf16.msra.mxu1 %v272_v1  ;;  %v286_v6 = vld [vmem:[%s409_s1 + $0x14] ss:$8 sps:$4 sm:$0xff]   ;;  %v168_v8 = vld [vmem:[%s410_s2] sm:$0xff]  ;;  %v169_v11 = vld [vmem:[%s410_s2 + $0x8] sm:$0xff] }
   0x4   :  { %121 = vmatprep.subr.bf16.mxu0 %v287_v0  ;;  %252 = vmatprep.subr.bf16.mxu1 %v287_v0  ;;  %v171_v9 = vld [vmem:[%s410_s2 + $0x18] sm:$0xff]  ;;  %v276_v10 = vld [vmem:[%s408_s0 + $0x20] sm:$0xff]   ;;  %v197_v12 = vld [vmem:[%s411_s3 + $0x8] sm:$0xff] }
   0x5   :  { %249 = vmatprep.mubr.msk.bf16.mxu0 %vm112_vm0, %v283_v5  ;;  %184 = vperm.xlu1 %271, %v170_v7   ;;  %v277_v13 = vld [vmem:[%s408_s0 + $0x28] sm:$0xff]   ;;  %v196_v14 = vld [vmem:[%s411_s3] sm:$0xff]  ;;  %v199_v15 = vld [vmem:[%s411_s3 + $0x18] sm:$0xff] }
   0x6   :  { %250 = vmatprep.mubr.msk.bf16.mxu1 %vm112_vm0, %v286_v6  ;;  %174 = vperm.xlu0 %270, %v168_v8   ;;  %v278_v16 = vld [vmem:[%s408_s0 + $0x30] sm:$0xff]   ;;  %v279_v18 = vld [vmem:[%s408_s0 + $0x38] sm:$0xff]   ;;  %v280_v19 = vld [vmem:[%s408_s0 + $0x40] sm:$0xff]  }
   0x7   :  { %122 = vmatpush1.bf16.msra.mxu0 %v273_v2  ;;  %261 = vmatpush1.bf16.msra.mxu1 %v273_v2  ;;  %v198_v17 = vld [vmem:[%s411_s3 + $0x10] sm:$0xff]  ;;  %v281_v20 = vld [vmem:[%s409_s1] ss:$8 sps:$4 sm:$0xff]  }
   0x8   :  { %123 = vmatprep.subr.bf16.mxu0 %v287_v0  ;;  %253 = vmatprep.subr.bf16.mxu1 %v287_v0  ;;  %v284_v21 = vld [vmem:[%s409_s1 + $0x10] ss:$8 sps:$4 sm:$0xff]  }
   0x9   :  { %189 = vperm.xlu1 %271, %v171_v9  }
   0xa   :  { %179 = vperm.xlu0 %270, %v169_v11  }
   0xb   :  { %124 = vmatpush1.bf16.msra.mxu0 %v274_v3  ;;  %262 = vmatpush1.bf16.msra.mxu1 %v274_v3 }
   0xc   :  { %125 = vmatprep.subr.bf16.mxu0 %v287_v0  ;;  %254 = vmatprep.subr.bf16.mxu1 %v287_v0 }
   0xd   :  { %207 = vperm.xlu1 %271, %v197_v12  }
   0xe   :  { %202 = vperm.xlu0 %270, %v196_v14  }
   0xf   :  { %126 = vmatpush1.bf16.msra.mxu0 %v275_v4  ;;  %263 = vmatpush1.bf16.msra.mxu1 %v275_v4 }
  0x10   :  { %127 = vmatprep.subr.bf16.mxu0 %v287_v0  ;;  %255 = vmatprep.subr.bf16.mxu1 %v287_v0 }
  0x11   :  { %217 = vperm.xlu1 %271, %v199_v15  }
  0x12   :  { %212 = vperm.xlu0 %270, %v198_v17  }
  0x13   :  { %128 = vmatpush1.bf16.msra.mxu0 %v276_v10  ;;  %264 = vmatpush1.bf16.msra.mxu1 %v276_v10 }
  0x14   :  { %129 = vmatprep.subr.bf16.mxu0 %v287_v0  ;;  %256 = vmatprep.subr.bf16.mxu1 %v287_v0 }
  0x17   :  { %130 = vmatpush1.bf16.msra.mxu0 %v277_v13  ;;  %265 = vmatpush1.bf16.msra.mxu1 %v277_v13 }
  0x18   :  { %131 = vmatprep.subr.bf16.mxu0 %v287_v0  ;;  %257 = vmatprep.subr.bf16.mxu1 %v287_v0 }
  0x1b   :  { %132 = vmatpush1.bf16.msra.mxu0 %v278_v16  ;;  %266 = vmatpush1.bf16.msra.mxu1 %v278_v16 }
  0x1c   :  { %133 = vmatprep.subr.bf16.mxu0 %v287_v0  ;;  %258 = vmatprep.subr.bf16.mxu1 %v287_v0 }
  0x1f   :  { %134 = vmatpush1.bf16.msra.mxu0 %v279_v18  ;;  %267 = vmatpush1.bf16.msra.mxu1 %v279_v18 }
  0x20   :  { %135 = vmatprep.subr.bf16.mxu0 %v287_v0  ;;  %259 = vmatprep.subr.bf16.mxu1 %v287_v0 }
  0x23   :  { %136 = vmatpush1.bf16.msra.mxu0 %v280_v19  ;;  %268 = vmatpush1.bf16.msra.mxu1 %v280_v19 }
  0x26   :  { %152 = vmatmul.mubr.bf16.vlgmr.msra.gmra.mrb[0].mxu0 %v281_v20  ;;  %160 = vmatmul.mubr.bf16.vlgmr.msra.gmra.mrb[0].mxu1 %v284_v21 }
  0x84   :  { %v185_v23 = vpop.permute.xlu1 %184 }
  0x85   :  { %v175_v22 = vpop.permute.xlu0 %174 }
  0x88   :  { %v190_v25 = vpop.permute.xlu1 %189 }
  0x89   :  { %v180_v24 = vpop.permute.xlu0 %179 }
  0x8c   :  { %v208_v27 = vpop.permute.xlu1 %207 }
  0x8d   :  { %v203_v26 = vpop.permute.xlu0 %202 }
  0x90   :  { %v218_v43 = vpop.permute.xlu1 %217 }
  0x91   :  { %v213_v28 = vpop.permute.xlu0 %212 }
  0xf9   :  { %v153_v29 = vpop.f32.mrb[0].mxu0  ;;  %v161_v30 = vpop.f32.mrb[0].mxu1 }
  0xfa   :  { %v192_v31 = vmul.f32 %v175_v22, %v153_v29  ;;  %v194_v32 = vmul.f32 %v185_v23, %v161_v30  ;;  %v155_v33 = vpop.f32.mrb[1].mxu0  ;;  %v163_v34 = vpop.f32.mrb[1].mxu1 }
  0xfb   :  { %v156_v35 = vpop.f32.mrb[2].mxu0  ;;  %v164_v36 = vpop.f32.mrb[2].mxu1 }
  0xfc   :  { %v220_v37 = vadd.f32 %v203_v26, %v192_v31  ;;  %v222_v38 = vadd.f32 %v213_v28, %v194_v32  ;;  %v193_v39 = vmul.f32 %v180_v24, %v156_v35  ;;  %v195_v40 = vmul.f32 %v190_v25, %v164_v36  ;;  %v158_v41 = vpop.f32.mrb[3].mxu0  ;;  %v166_v42 = vpop.f32.mrb[3].mxu1 }
  0xfe   :  { %v224_v44 = vmax.f32 %v220_v37, 0.0  ;;  %v226_v45 = vmax.f32 %v222_v38, 0.0  ;;  %v221_v46 = vadd.f32 %v208_v27, %v193_v39  ;;  %v223_v47 = vadd.f32 %v218_v43, %v195_v40 }
 0x100   :  { %228 = vst [vmem:[%s412_s4] sm:$0xff] %v224_v44  ;;  %230 = vst [vmem:[%s412_s4 + $0x10] sm:$0xff] %v226_v45  ;;  %v225_v48 = vmax.f32 %v221_v46, 0.0  ;;  %v227_v49 = vmax.f32 %v223_v47, 0.0 }
 0x102   :  { %229 = vst [vmem:[%s412_s4 + $0x8] sm:$0xff] %v225_v48  ;;  %231 = vst [vmem:[%s412_s4 + $0x18] sm:$0xff] %v227_v49 }

</bundles_post_ra>
